<compile_context>
chip_gen: v7x
topology: tpu7x:2x2x1
jax: 0.10.0
libtpu: 0.0.40
codegen_flags: <defaults>
</compile_context>

<pallas_src>
import math

import jax
import jax.numpy as jnp
from jax.experimental import pallas as pl
from jax.experimental.pallas import tpu as pltpu

NUM_FREQS = 128
TEMPERATURE = 100.0
FEAT = 2 * NUM_FREQS  # 256


# ---------------------------------------------------------------------------
# Kernel: feat = sin(x*f + phase); h = feat @ W_fold + b_fold; s = SiLU(h);
#         out = s @ W2_blockdiag + b2_tiled.   Two MXU calls, one full-width store.
# ---------------------------------------------------------------------------
def reward_projector_kernel(x_ref, fourier_ref, wf_ref, bf_ref, w2_ref, b2_ref, out_ref):
    x = x_ref[...]                                   # (B, 1) f32
    freq = fourier_ref[0:1, :]                       # (1, FEAT) interleaved [f0, f0, f1, f1, ...]
    phase = fourier_ref[1:2, :]                      # (1, FEAT) [0, pi/2, 0, pi/2, ...]

    # Fourier embedding, computed once: col 2k -> sin(f_k x), col 2k+1 -> sin(f_k x + pi/2) = cos(f_k x)
    feat = jnp.sin(x * freq + phase)                 # (B, FEAT) f32

    # Folded projection + MLP layer-1 in ONE bf16 MXU call with f32 accumulation.
    h = jnp.dot(feat.astype(wf_ref.dtype), wf_ref[...],
                preferred_element_type=jnp.float32) + bf_ref[...]       # (B, nt*2*dim) f32

    # SiLU: exp and reciprocal both live on the EUP slot.
    s = h * pl.reciprocal(1.0 + jnp.exp(-h), approx=True)               # (B, nt*2*dim) f32

    # All tokens' second linear as one matmul against a block-diagonal weight,
    # followed by a single lane-dense (full-vreg) store.
    out_ref[...] = jnp.dot(s.astype(w2_ref.dtype), w2_ref[...],
                           preferred_element_type=jnp.float32) + b2_ref[...]   # (B, nt*dim)


# ---------------------------------------------------------------------------
# One-time (offline) parameter preparation: Fourier tables, weight fold, block-diag layer-2.
# All folding is done in f32; only the storage of the two large matmul weights is bf16.
# ---------------------------------------------------------------------------
def prepare_params(freq_bands, wp, bp, w1, b1, w2, b2, *, num_tokens):
    two_dim, dim = w2.shape

    # Interleaved freq / phase so sin(x*freq + phase) reproduces [sin f0 x, cos f0 x, sin f1 x, ...].
    freq_rep = jnp.repeat(freq_bands.astype(jnp.float32), 2)
    phase = jnp.tile(jnp.array([0.0, math.pi / 2], jnp.float32), NUM_FREQS)
    fourier = jnp.stack([freq_rep, phase], axis=0)                       # (2, FEAT) f32

    # Fold proj(256 -> nt*256) with mlp layer-1 (256 -> 2*dim): f32 fold, bf16 storage.
    wf = jnp.einsum('fnk,kh->fnh', wp.reshape(FEAT, num_tokens, FEAT), w1)      # (FEAT, nt, 2*dim)
    wf = wf.reshape(FEAT, num_tokens * two_dim)
    bf = (bp.reshape(num_tokens, FEAT) @ w1 + b1).reshape(1, num_tokens * two_dim)

    # Block-diagonal layer-2 weight: out[:, t*dim:(t+1)*dim] = s[:, t*2d:(t+1)*2d] @ w2.
    w2blk = jnp.einsum('ts,hd->thsd', jnp.eye(num_tokens, dtype=w2.dtype), w2)
    w2blk = w2blk.reshape(num_tokens * two_dim, num_tokens * dim)
    b2t = jnp.tile(b2, num_tokens).reshape(1, num_tokens * dim)

    return (fourier, wf.astype(jnp.bfloat16), bf.astype(jnp.float32),
            w2blk.astype(jnp.bfloat16), b2t.astype(jnp.float32))


# ---------------------------------------------------------------------------
# Wrapper: gridless pallas_call, whole arrays resident in VMEM (no pipeline machinery).
# ---------------------------------------------------------------------------
def reward_projector(x, fourier, wf, bf, w2blk, b2t, *, num_tokens, dim):
    B = x.shape[0]
    B_pad = ((B + 7) // 8) * 8                       # sublane-dense batch
    x_pad = jnp.pad(x, ((0, B_pad - B), (0, 0))) if B_pad != B else x

    fold_out = num_tokens * 2 * dim
    out_cols = num_tokens * dim
    flops = 2 * B_pad * FEAT * fold_out + 2 * B_pad * fold_out * out_cols
    transcendentals = B_pad * FEAT + 2 * B_pad * fold_out               # sin + exp + rcp
    bytes_accessed = (x_pad.size * 4 + fourier.size * 4 + wf.size * 2 + bf.size * 4
                      + w2blk.size * 2 + b2t.size * 4 + B_pad * out_cols * 4)

    vmem = pl.BlockSpec(memory_space=pltpu.MemorySpace.VMEM)
    out2d = pl.pallas_call(
        reward_projector_kernel,
        out_shape=jax.ShapeDtypeStruct((B_pad, out_cols), jnp.float32),
        in_specs=[vmem] * 6,
        out_specs=vmem,
        cost_estimate=pl.CostEstimate(flops=flops,
                                      transcendentals=transcendentals,
                                      bytes_accessed=bytes_accessed),
    )(x_pad, fourier, wf, bf, w2blk, b2t)

    return out2d[:B].reshape(B, num_tokens, dim)     # drop pad rows; free row-major reshape


# ---------------------------------------------------------------------------
# References.
# ---------------------------------------------------------------------------
def reference_f32(x, freq_bands, wp, bp, w1, b1, w2, b2, *, num_tokens, dim):
    """Faithful f32 mirror of the PyTorch forward (weights already transposed to (in, out))."""
    B = x.shape[0]
    sin = jnp.sin(x * freq_bands)                    # (B, 128)
    cos = jnp.cos(x * freq_bands)                    # (B, 128)
    feat = jnp.stack([sin, cos], axis=-1).reshape(B, FEAT)      # interleaved [sin, cos, ...]
    y = feat @ wp + bp
    y = y.reshape(B, num_tokens, FEAT)
    h = y @ w1 + b1
    h = h * jax.nn.sigmoid(h)
    return h @ w2 + b2                                # (B, num_tokens, dim)


def reference_folded(x, fourier, wf_bf16, bf, w2blk_bf16, b2t, *, num_tokens, dim):
    """Mirror of the kernel's own numerics (fold + bf16 storage + phase trick)."""
    B = x.shape[0]
    feat = jnp.sin(x * fourier[0:1, :] + fourier[1:2, :])
    h = jnp.dot(feat.astype(jnp.bfloat16), wf_bf16, preferred_element_type=jnp.float32) + bf
    s = h * jax.nn.sigmoid(h)
    o = jnp.dot(s.astype(jnp.bfloat16), w2blk_bf16, preferred_element_type=jnp.float32) + b2t
    return o.reshape(B, num_tokens, dim)


if __name__ == "__main__":
    num_tokens, dim, B = 8, 32, 2

    key = jax.random.PRNGKey(0)
    k1, k2, k3, kx = jax.random.split(key, 4)

    def xavier_uniform(k, fan_in, fan_out):
        bound = math.sqrt(6.0 / (fan_in + fan_out))
        # stored as (in, out) so every matmul is act @ W
        return jax.random.uniform(k, (fan_in, fan_out), jnp.float32, -bound, bound)

    # torch.nn.Linear(256, nt*256), Linear(256, dim*2), Linear(dim*2, dim); biases zero (init_weights)
    wp = xavier_uniform(k1, FEAT, num_tokens * FEAT)
    bp = jnp.zeros((num_tokens * FEAT,), jnp.float32)
    w1 = xavier_uniform(k2, FEAT, dim * 2)
    b1 = jnp.zeros((dim * 2,), jnp.float32)
    w2 = xavier_uniform(k3, dim * 2, dim)
    b2 = jnp.zeros((dim,), jnp.float32)

    freq_bands = TEMPERATURE ** (jnp.arange(NUM_FREQS, dtype=jnp.float32) / NUM_FREQS)
    x = jax.random.normal(kx, (B, 1), jnp.float32)

    # Offline weight fold / block-diag / Fourier tables (f32 fold, bf16 storage of big weights).
    fourier, wf, bf, w2blk, b2t = prepare_params(freq_bands, wp, bp, w1, b1, w2, b2,
                                                 num_tokens=num_tokens)

    out = reward_projector(x, fourier, wf, bf, w2blk, b2t, num_tokens=num_tokens, dim=dim)
    out = jax.block_until_ready(out)
    assert out.shape == (B, num_tokens, dim)

    # Tight check vs a reference that mirrors the kernel's own folded/bf16 numerics.
    ref_q = reference_folded(x, fourier, wf, bf, w2blk, b2t, num_tokens=num_tokens, dim=dim)
    assert jnp.allclose(out, ref_q, atol=3e-3, rtol=3e-3), "mismatch vs folded bf16 reference"

    # Semantic check vs the faithful f32 PyTorch-equivalent forward (tolerance loosened only
    # because of the intentional bf16 storage of the two large matmul weights).
    ref = reference_f32(x, freq_bands, wp, bp, w1, b1, w2, b2, num_tokens=num_tokens, dim=dim)
    assert jnp.allclose(out, ref, atol=2e-2, rtol=2e-2), "mismatch vs f32 reference"

    print("KERNEL_OK")
</pallas_src>

<mosaic_0001>
module attributes {stable_mosaic.version = 11 : i64} {
  func.func @reward_projector_kernel(%arg0: memref<8x1xf32, #tpu.memory_space<vmem>>, %arg1: memref<2x256xf32, #tpu.memory_space<vmem>>, %arg2: memref<256x512xbf16, #tpu.memory_space<vmem>>, %arg3: memref<1x512xf32, #tpu.memory_space<vmem>>, %arg4: memref<512x256xbf16, #tpu.memory_space<vmem>>, %arg5: memref<1x256xf32, #tpu.memory_space<vmem>>, %arg6: memref<8x256xf32, #tpu.memory_space<vmem>>) attributes {dimension_semantics = [], scalar_prefetch = 0 : i64, scratch_operands = 0 : i64, tpu.core_type = #tpu.core_type<tc>} {
    %c0 = arith.constant 0 : index
    %c0_0 = arith.constant 0 : index
    %0 = vector.load %arg0[%c0, %c0_0] : memref<8x1xf32, #tpu.memory_space<vmem>>, vector<8x1xf32>
    %c0_1 = arith.constant 0 : index
    %c0_2 = arith.constant 0 : index
    %1 = vector.load %arg1[%c0_1, %c0_2] : memref<2x256xf32, #tpu.memory_space<vmem>>, vector<1x256xf32>
    %c1 = arith.constant 1 : index
    %c0_3 = arith.constant 0 : index
    %2 = vector.load %arg1[%c1, %c0_3] : memref<2x256xf32, #tpu.memory_space<vmem>>, vector<1x256xf32>
    %3 = vector.broadcast %0 : vector<8x1xf32> to vector<8x256xf32>
    %4 = vector.broadcast %1 : vector<1x256xf32> to vector<8x256xf32>
    %5 = arith.mulf %3, %4 : vector<8x256xf32>
    %6 = vector.broadcast %2 : vector<1x256xf32> to vector<8x256xf32>
    %7 = arith.addf %5, %6 : vector<8x256xf32>
    %8 = math.sin %7 : vector<8x256xf32>
    %9 = arith.truncf %8 : vector<8x256xf32> to vector<8x256xbf16>
    %c0_4 = arith.constant 0 : index
    %c0_5 = arith.constant 0 : index
    %10 = vector.load %arg2[%c0_4, %c0_5] : memref<256x512xbf16, #tpu.memory_space<vmem>>, vector<256x512xbf16>
    %cst = arith.constant dense<0.000000e+00> : vector<8x512xf32>
    %11 = tpu.matmul %9, %10, %cst {dimension_numbers = #tpu.dot_dimension_numbers<[1], [0], [0], [1], [0, 0, 1, 1], [], []>} : vector<8x256xbf16>, vector<256x512xbf16>, vector<8x512xf32> -> vector<8x512xf32>
    %c0_6 = arith.constant 0 : index
    %c0_7 = arith.constant 0 : index
    %12 = vector.load %arg3[%c0_6, %c0_7] : memref<1x512xf32, #tpu.memory_space<vmem>>, vector<1x512xf32>
    %13 = vector.broadcast %12 : vector<1x512xf32> to vector<8x512xf32>
    %14 = arith.addf %11, %13 : vector<8x512xf32>
    %cst_8 = arith.constant 0.000000e+00 : f32
    %15 = vector.broadcast %cst_8 : f32 to vector<8x512xf32>
    %16 = arith.subf %15, %14 : vector<8x512xf32>
    %17 = math.exp %16 : vector<8x512xf32>
    %cst_9 = arith.constant 1.000000e+00 : f32
    %18 = vector.broadcast %cst_9 : f32 to vector<8x512xf32>
    %19 = arith.addf %18, %17 : vector<8x512xf32>
    %20 = tpu.reciprocal %19 {approx = true} : vector<8x512xf32> -> vector<8x512xf32>
    %21 = arith.mulf %14, %20 : vector<8x512xf32>
    %22 = arith.truncf %21 : vector<8x512xf32> to vector<8x512xbf16>
    %c0_10 = arith.constant 0 : index
    %c0_11 = arith.constant 0 : index
    %23 = vector.load %arg4[%c0_10, %c0_11] : memref<512x256xbf16, #tpu.memory_space<vmem>>, vector<512x256xbf16>
    %cst_12 = arith.constant dense<0.000000e+00> : vector<8x256xf32>
    %24 = tpu.matmul %22, %23, %cst_12 {dimension_numbers = #tpu.dot_dimension_numbers<[1], [0], [0], [1], [0, 0, 1, 1], [], []>} : vector<8x512xbf16>, vector<512x256xbf16>, vector<8x256xf32> -> vector<8x256xf32>
    %c0_13 = arith.constant 0 : index
    %c0_14 = arith.constant 0 : index
    %25 = vector.load %arg5[%c0_13, %c0_14] : memref<1x256xf32, #tpu.memory_space<vmem>>, vector<1x256xf32>
    %26 = vector.broadcast %25 : vector<1x256xf32> to vector<8x256xf32>
    %27 = arith.addf %24, %26 : vector<8x256xf32>
    %c0_15 = arith.constant 0 : index
    %c0_16 = arith.constant 0 : index
    %28 = vector.load %arg6[%c0_15, %c0_16] : memref<8x256xf32, #tpu.memory_space<vmem>>, vector<8x256xf32>
    tpu.vector_store %arg6[%c0_15, %c0_16], %27 {strides = array<i32>} : memref<8x256xf32, #tpu.memory_space<vmem>>, vector<8x256xf32>,
    return
  }
}

</mosaic_0001>

<bundles_post_ra>
// kernel: tpu_custom_call.1
= control target key start
LH: loop header
LB: loop body
LE: loop exit
PB: predicated region body
PF: predicated region fallthrough
CT: control target
= control target key end

     0   :  { %11 = vsyncpa [#allocation3], 0  ;;  %s1990_s0 = inlined_call_operand.vmem [shape: f32[8,1], index: 0, kind: input, shape index: {}]   ;;  %s1991_s1 = inlined_call_operand.vmem [shape: f32[2,256], index: 1, kind: input, shape index: {}]   ;;  %s1992_s2 = inlined_call_operand.hbm [shape: bf16[256,512], index: 2, kind: input, shape index: {}]   ;;  %s1993_s3 = inlined_call_operand.vmem [shape: f32[1,512], index: 3, kind: input, shape index: {}]   ;;  %s1994_s4 = inlined_call_operand.hbm [shape: bf16[512,256], index: 4, kind: input, shape index: {}]   ;;  %s1995_s5 = inlined_call_operand.vmem [shape: f32[1,256], index: 5, kind: input, shape index: {}]   ;;  %s1996_s6 = inlined_call_operand.hbm [shape: f32[8,256], index: 6, kind: output, shape index: {}]  }
   0x1   :  { %12 = vsyncpa [#allocation6], 0 }
   0x2   :  { %13 = vsyncpa [#allocation4], 0  ;;  %s1763_s21 = smov [#allocation2]   ;;  %s1691_s25 = scalar_lea.hbm %s1992_s2, 8192 }
   0x3   :  { %s23_s22 = sshll.u32 %s1763_s21, 4  ;;  %p1692_p0 = scmp.ne.s32.totalorder %s1992_s2, %s1691_s25  ;;  %s24_s22 = int_to_ptr.vmem [resolvable:$true] %s23_s22 }
   0x4   :  { %p1695_p1 = scmp.lt.u32.totalorder %s1691_s25, %s1992_s2 }
   0x6   :  { %p1697_p2 = pnand %p1695_p1, %p1692_p0 }
   0x8   :  { %1700 = shalt.err (!%p1697_p2)
}
   0x9   :  { %s1701_s30 = scalar_lea.vmem %s24_s22, 8192  ;;  %p1706_p4 = scmp.lt.s32.totalorder %s24_s22, %s24_s22 }
   0xa   :  { %p1702_p3 = scmp.ne.s32.totalorder %s24_s22, %s1701_s30  ;;  %p1707_p5 = scmp.lt.s32.totalorder %s1701_s30, %s1701_s30 }
   0xc   :  { %p1708_p6 = por %p1707_p5, %p1706_p4 }
   0xe   :  { %p1709_p7 = pnand %p1708_p6, %p1702_p3 }
  0x10   :  { %1712 = shalt.err (!%p1709_p7)
}
  0x11   :  { %s1764_s7 = smov 256   ;;  %s1765_s8 = smov 16  }
  0x12   :  { %29 = dma.hbm_to_vmem [thread:$0]  %s1992_s2, 8192, %s24_s22, [#allocation3], %s1764_s7, %s1764_s7, %s1765_s8  }
  0x13   :  { %s1766_s11 = smov [#allocation5]   ;;  %s1713_s15 = scalar_lea.hbm %s1994_s4, 8192 }
  0x14   :  { %s37_s12 = sshll.u32 %s1766_s11, 4  ;;  %p1714_p8 = scmp.ne.s32.totalorder %s1994_s4, %s1713_s15  ;;  %s38_s12 = int_to_ptr.vmem [resolvable:$true] %s37_s12 }
  0x15   :  { %p1717_p9 = scmp.lt.u32.totalorder %s1713_s15, %s1994_s4 }
  0x17   :  { %p1719_p10 = pnand %p1717_p9, %p1714_p8 }
  0x19   :  { %1722 = shalt.err (!%p1719_p10)
}
  0x1a   :  { %s1723_s20 = scalar_lea.vmem %s38_s12, 8192  ;;  %p1728_p12 = scmp.lt.s32.totalorder %s38_s12, %s38_s12 }
  0x1b   :  { %p1724_p11 = scmp.ne.s32.totalorder %s38_s12, %s1723_s20  ;;  %p1729_p13 = scmp.lt.s32.totalorder %s1723_s20, %s1723_s20 }
  0x1d   :  { %p1730_p0 = por %p1729_p13, %p1728_p12 }
  0x1f   :  { %p1731_p1 = pnand %p1730_p0, %p1724_p11 }
  0x21   :  { %1734 = shalt.err (!%p1731_p1)
}
  0x22   :  { %s1767_s2 = smov 128   ;;  %s1768_s21 = smov 8  }
  0x23   :  { %43 = dma.hbm_to_vmem [thread:$0]  %s1994_s4, 8192, %s38_s12, [#allocation6], %s1767_s2, %s1767_s2, %s1768_s21  }
  0x24   :  { %1757 = dma.done.wait [#allocation3], 8192  }
  0x25   :  { %1758 = vsyncadd [#allocation3], 4294959104 }
  0x26   :  { %1759 = dma.done.wait [#allocation6], 8192  }
  0x27   :  { %1760 = vsyncadd [#allocation6], 4294959104  ;;  %v1769_v0 = vmov 0   ;;  %v52_v1 = vld [vmem:[%s1990_s0] sm:$0xff]  ;;  %v1475_v2 = vld [vmem:[#allocation2 + $0x4] ss:$16 sps:$4 sm:$0xff]   ;;  %v62_v35 = vlaneseq }
  0x28   :  { %1474 = vset.pattern.permute.xlu0 %v1769_v0  ;;  %v1477_v3 = vld [vmem:[#allocation2] ss:$16 sps:$4 sm:$0xff]   ;;  %703 = vmatprep.subr.bf16.mxu1 %v1475_v2  ;;  %v1478_v4 = vld [vmem:[#allocation2 + $0x24] ss:$16 sps:$4 sm:$0xff]   ;;  %v1525_v34 = vld [vmem:[#allocation2 + $0xc] ss:$16 sps:$4 sm:$0xff]  }
  0x29   :  { %58 = vperm.xlu0 %1474, %v52_v1   ;;  %704 = vmatpush1.bf16.msra.mxu1 %v1477_v3  ;;  %v1480_v5 = vld [vmem:[#allocation2 + $0x20] ss:$16 sps:$4 sm:$0xff]   ;;  %v1481_v6 = vld [vmem:[#allocation2 + $0x44] ss:$16 sps:$4 sm:$0xff]   ;;  %v1839_v36 = vshrl.u32 %v62_v35, 7  ;;  %s1776_s30 = smov [#allocation7]  }
  0x2a   :  { %705 = vmatprep.subr.bf16.mxu1 %v1478_v4  ;;  %v1483_v7 = vld [vmem:[#allocation2 + $0x40] ss:$16 sps:$4 sm:$0xff]   ;;  %v1484_v8 = vld [vmem:[#allocation2 + $0x64] ss:$16 sps:$4 sm:$0xff]   ;;  %s1299_s7 = sshll.u32 %s1776_s30, 4  ;;  %s1300_s7 = int_to_ptr.vmem [resolvable:$true] %s1299_s7 }
  0x2b   :  { %v1486_v9 = vld [vmem:[#allocation2 + $0x60] ss:$16 sps:$4 sm:$0xff]   ;;  %v1487_v10 = vld [vmem:[#allocation2 + $0x84] ss:$16 sps:$4 sm:$0xff]   ;;  %v1842_v37 = vsub.s32 0, %v1839_v36  ;;  %v1845_v38 = vsub.s32 1, %v1839_v36  ;;  %p1740_p3 = scmp.lt.s32.totalorder %s1300_s7, %s1300_s7 }
  0x2c   :  { %v1489_v11 = vld [vmem:[#allocation2 + $0x80] ss:$16 sps:$4 sm:$0xff]   ;;  %v1490_v12 = vld [vmem:[#allocation2 + $0xa4] ss:$16 sps:$4 sm:$0xff]   ;;  %s1735_s8 = scalar_lea.vmem %s1300_s7, 256 }
  0x2d   :  { %706 = vmatpush1.bf16.msra.mxu1 %v1480_v5  ;;  %v1492_v13 = vld [vmem:[#allocation2 + $0xa0] ss:$16 sps:$4 sm:$0xff]   ;;  %v1493_v14 = vld [vmem:[#allocation2 + $0xc4] ss:$16 sps:$4 sm:$0xff]   ;;  %p1736_p2 = scmp.ne.s32.totalorder %s1300_s7, %s1735_s8  ;;  %p1741_p4 = scmp.lt.s32.totalorder %s1735_s8, %s1735_s8 }
  0x2e   :  { %707 = vmatprep.subr.bf16.mxu1 %v1481_v6  ;;  %v1495_v15 = vld [vmem:[#allocation2 + $0xc0] ss:$16 sps:$4 sm:$0xff]   ;;  %v1496_v16 = vld [vmem:[#allocation2 + $0xe4] ss:$16 sps:$4 sm:$0xff]   ;;  %v1770_v6 = vmov 683565275  }
  0x2f   :  { %v1498_v17 = vld [vmem:[#allocation2 + $0xe0] ss:$16 sps:$4 sm:$0xff]   ;;  %v1499_v18 = vld [vmem:[#allocation2 + $0x104] ss:$16 sps:$4 sm:$0xff]   ;;  %p1742_p5 = por %p1741_p4, %p1740_p3 }
  0x30   :  { %v1501_v19 = vld [vmem:[#allocation2 + $0x100] ss:$16 sps:$4 sm:$0xff]   ;;  %v1502_v20 = vld [vmem:[#allocation2 + $0x124] ss:$16 sps:$4 sm:$0xff]  }
  0x31   :  { %708 = vmatpush1.bf16.msra.mxu1 %v1483_v7  ;;  %v1504_v21 = vld [vmem:[#allocation2 + $0x120] ss:$16 sps:$4 sm:$0xff]   ;;  %v1505_v22 = vld [vmem:[#allocation2 + $0x144] ss:$16 sps:$4 sm:$0xff]   ;;  %p1743_p6 = pnand %p1742_p5, %p1736_p2 }
  0x32   :  { %709 = vmatprep.subr.bf16.mxu1 %v1484_v8  ;;  %v1507_v23 = vld [vmem:[#allocation2 + $0x140] ss:$16 sps:$4 sm:$0xff]   ;;  %v1508_v24 = vld [vmem:[#allocation2 + $0x164] ss:$16 sps:$4 sm:$0xff]   ;;  %v1771_v8 = vmov 2475754826  }
  0x33   :  { %v1510_v25 = vld [vmem:[#allocation2 + $0x160] ss:$16 sps:$4 sm:$0xff]   ;;  %v1511_v26 = vld [vmem:[#allocation2 + $0x184] ss:$16 sps:$4 sm:$0xff]  }
  0x34   :  { %v1513_v27 = vld [vmem:[#allocation2 + $0x180] ss:$16 sps:$4 sm:$0xff]   ;;  %v1514_v28 = vld [vmem:[#allocation2 + $0x1a4] ss:$16 sps:$4 sm:$0xff]  }
  0x35   :  { %710 = vmatpush1.bf16.msra.mxu1 %v1486_v9  ;;  %v1516_v29 = vld [vmem:[#allocation2 + $0x1a0] ss:$16 sps:$4 sm:$0xff]   ;;  %v1517_v30 = vld [vmem:[#allocation2 + $0x1c4] ss:$16 sps:$4 sm:$0xff]  }
  0x36   :  { %711 = vmatprep.subr.bf16.mxu1 %v1487_v10  ;;  %v1519_v31 = vld [vmem:[#allocation2 + $0x1c0] ss:$16 sps:$4 sm:$0xff]   ;;  %v1520_v32 = vld [vmem:[#allocation2 + $0x1e4] ss:$16 sps:$4 sm:$0xff]  }
  0x37   :  { %v1522_v33 = vld [vmem:[#allocation2 + $0x1e0] ss:$16 sps:$4 sm:$0xff]   ;;  %v53_v39 = vld [vmem:[%s1991_s1] ss:$2 sm:$0x3] }
  0x38   :  { %v1309_v40 = vld [vmem:[%s1991_s1 + $0x1] ss:$2 sm:$0x3]  ;;  %v65_v41 = vrot.slane %v53_v39, %v1842_v37  ;;  %v69_v42 = vrot.slane %v53_v39, %v1845_v38 }
  0x39   :  { %712 = vmatpush1.bf16.msra.mxu1 %v1489_v11  ;;  %v78_v43 = vrot.slane %v1309_v40, %v1842_v37  ;;  %v82_v44 = vrot.slane %v1309_v40, %v1845_v38  ;;  %v1772_v11 = vmov 2131351028  }
  0x3a   :  { %713 = vmatprep.subr.bf16.mxu1 %v1490_v12 }
  0x3d   :  { %714 = vmatpush1.bf16.msra.mxu1 %v1492_v13  ;;  %v1773_v13 = vmov 2102212464  }
  0x3e   :  { %715 = vmatprep.subr.bf16.mxu1 %v1493_v14 }
  0x41   :  { %716 = vmatpush1.bf16.msra.mxu1 %v1495_v15  ;;  %v1774_v15 = vmov 920167782  }
  0x42   :  { %717 = vmatprep.subr.bf16.mxu1 %v1496_v16 }
  0x45   :  { %718 = vmatpush1.bf16.msra.mxu1 %v1498_v17 }
  0x46   :  { %719 = vmatprep.subr.bf16.mxu1 %v1499_v18 }
  0x49   :  { %720 = vmatpush1.bf16.msra.mxu1 %v1501_v19 }
  0x4a   :  { %721 = vmatprep.subr.bf16.mxu1 %v1502_v20 }
  0x4d   :  { %722 = vmatpush1.bf16.msra.mxu1 %v1504_v21 }
  0x4e   :  { %723 = vmatprep.subr.bf16.mxu1 %v1505_v22  ;;  %v1775_v22 = vmov 1326507024  }
  0x51   :  { %724 = vmatpush1.bf16.msra.mxu1 %v1507_v23 }
  0x52   :  { %725 = vmatprep.subr.bf16.mxu1 %v1508_v24 }
  0x55   :  { %726 = vmatpush1.bf16.msra.mxu1 %v1510_v25 }
  0x56   :  { %727 = vmatprep.subr.bf16.mxu1 %v1511_v26 }
  0x59   :  { %728 = vmatpush1.bf16.msra.mxu1 %v1513_v27 }
  0x5a   :  { %729 = vmatprep.subr.bf16.mxu1 %v1514_v28 }
  0x5d   :  { %730 = vmatpush1.bf16.msra.mxu1 %v1516_v29 }
  0x5e   :  { %731 = vmatprep.subr.bf16.mxu1 %v1517_v30 }
  0x61   :  { %732 = vmatpush1.bf16.msra.mxu1 %v1519_v31 }
  0x62   :  { %733 = vmatprep.subr.bf16.mxu1 %v1520_v32 }
  0x65   :  { %734 = vmatpush1.bf16.msra.mxu1 %v1522_v33 }
  0x66   :  { %744 = vmatprep.subr.bf16.mxu1 %v1525_v34 }
  0xa8   :  { %v59_v45 = vpop.permute.xlu0 %58 }
  0xa9   :  { %v72_v46 = vmul.f32 %v65_v41, %v59_v45  ;;  %v73_v47 = vmul.f32 %v69_v42, %v59_v45 }
  0xab   :  { %v1857_v48 = vadd.f32 %v78_v43, %v72_v46  ;;  %v1859_v49 = vadd.f32 %v82_v44, %v73_v47 }
  0xad   :  { %v87_v50 = vand.u32 2147483647, %v1857_v48  ;;  %v90_v51 = vand.u32 2139095040, %v1857_v48  ;;  %v194_v52 = vand.u32 2139095040, %v1859_v49  ;;  %v191_v61 = vand.u32 2147483647, %v1859_v49 }
  0xae   :  { %vm89_vm14 = vcmp.lt.s32.totalorder %v1857_v48, 0 }
  0xaf   :  { %v91_v53 = vshrl.u32 %v90_v51, 23  ;;  %v195_v54 = vshrl.u32 %v194_v52, 23  ;;  %v94_v55 = vand.u32 8388607, %v87_v50  ;;  %v1873_v4 = vand.u32 8388607, %v191_v61 }
  0xb0   :  { %vm1943_vm15 = vcmp.le.f32.partialorder %v87_v50, 0.7853982 }
  0xb1   :  { %v1310_v56 = vadd.s32 4294967169, %v91_v53  ;;  %v1314_v57 = vadd.s32 4294967169, %v195_v54  ;;  %v95_v60 = vor.u32 8388608, %v94_v55 }
  0xb3   :  { %v97_v58 = vadd.s32 1, %v1310_v56  ;;  %v201_v59 = vadd.s32 1, %v1314_v57  ;;  %v1867_v2 = vshll.u32 %v95_v60, 8 }
  0xb5   :  { %vm98_vm0 = vcmp.gt.s32.totalorder %v97_v58, 0  ;;  %vm202_vm1 = vcmp.gt.s32.totalorder %v201_v59, 0 }
  0xb6   :  { %v99_v62 = vsel %vm98_vm0, %v97_v58, 0  ;;  %v203_v63 = vsel %vm202_vm1, %v201_v59, 0  ;;  %v199_v59 = vor.u32 8388608, %v1873_v4  ;;  %vm193_vm0 = vcmp.lt.s32.totalorder %v1859_v49, 0 }
  0xb7   :  { %v100_v0 = vshrl.u32 %v99_v62, 5  ;;  %v101_v1 = vand.u32 31, %v99_v62  ;;  %v1869_v3 = vshrl.u32 %v203_v63, 5  ;;  %v205_v10 = vand.u32 31, %v203_v63 }
  0xb8   :  { %vm192_vm1 = vcmp.le.f32.partialorder %v191_v61, 0.7853982 }
  0xb9   :  { %v102_v5 = vsub.s32 32, %v101_v1  ;;  %v104_v7 = vshll.u32 %v1770_v6, %v101_v1  ;;  %v107_v9 = vshll.u32 %v1771_v8, %v101_v1  ;;  %v110_v12 = vshll.u32 %v1772_v11, %v101_v1 }
  0xba   :  { %v113_v14 = vshll.u32 %v1773_v13, %v101_v1  ;;  %v116_v16 = vshll.u32 %v1774_v15, %v101_v1  ;;  %vm119_vm2 = vcmp.lt.s32.totalorder %v100_v0, 1  ;;  %vm120_vm3 = vcmp.lt.s32.totalorder %v100_v0, 2 }
  0xbb   :  { %v105_v17 = vshrl.u32 %v1771_v8, %v102_v5  ;;  %v108_v18 = vshrl.u32 %v1772_v11, %v102_v5  ;;  %v111_v19 = vshrl.u32 %v1773_v13, %v102_v5  ;;  %v103_v20 = vshrl.u32 %v1770_v6, %v102_v5 }
  0xbc   :  { %v114_v21 = vshrl.u32 %v1774_v15, %v102_v5  ;;  %v117_v23 = vshrl.u32 %v1775_v22, %v102_v5  ;;  %vm121_vm4 = vcmp.lt.s32.totalorder %v100_v0, 3  ;;  %v206_v27 = vsub.s32 32, %v205_v10 }
  0xbd   :  { %v106_v24 = vor.u32 %v105_v17, %v104_v7  ;;  %v109_v25 = vor.u32 %v108_v18, %v107_v9  ;;  %v112_v26 = vor.u32 %v111_v19, %v110_v12  ;;  %vm122_vm5 = vcmp.lt.s32.totalorder %v100_v0, 4 }
  0xbe   :  { %v115_v28 = vor.u32 %v114_v21, %v113_v14  ;;  %v118_v29 = vor.u32 %v117_v23, %v116_v16  ;;  %v217_v30 = vshll.u32 %v1773_v13, %v205_v10  ;;  %v218_v41 = vshrl.u32 %v1774_v15, %v206_v27 }
  0xbf   :  { %v123_v31 = vsel %vm119_vm2, %v103_v20, %v106_v24  ;;  %v124_v32 = vsel %vm122_vm5, %v112_v26, 2102212464  ;;  %v127_v33 = vsel %vm119_vm2, %v106_v24, %v109_v25  ;;  %v131_v34 = vsel %vm119_vm2, %v109_v25, %v112_v26  ;;  %v1571_v24 = vld [vmem:[#allocation5 + $0x4] ss:$8 sps:$4 sm:$0xff]  }
  0xc0   :  { %v125_v35 = vsel %vm121_vm4, %v109_v25, %v124_v32  ;;  %v128_v39 = vsel %vm122_vm5, %v115_v28, 920167782  ;;  %v132_v40 = vsel %vm122_vm5, %v118_v29, 1326507024  ;;  %v221_v45 = vshrl.u32 %v1775_v22, %v206_v27  ;;  %v1573_v25 = vld [vmem:[#allocation5] ss:$8 sps:$4 sm:$0xff]   ;;  %1209 = vmatprep.subr.bf16.mxu0 %v1571_v24 }
  0xc1   :  { %v126_v42 = vsel %vm120_vm3, %v123_v31, %v125_v35  ;;  %v129_v43 = vsel %vm121_vm4, %v112_v26, %v128_v39  ;;  %v133_v44 = vsel %vm121_vm4, %v115_v28, %v132_v40  ;;  %v219_v51 = vor.u32 %v218_v41, %v217_v30  ;;  %v1574_v30 = vld [vmem:[#allocation5 + $0x14] ss:$8 sps:$4 sm:$0xff]   ;;  %1210 = vmatpush1.bf16.msra.mxu0 %v1573_v25  ;;  %v1577_v35 = vld [vmem:[#allocation5 + $0x24] ss:$8 sps:$4 sm:$0xff]  }
  0xc2   :  { %v130_v46 = vsel %vm120_vm3, %v127_v33, %v129_v43  ;;  %v134_v47 = vsel %vm120_vm3, %v131_v34, %v133_v44  ;;  %v220_v52 = vshll.u32 %v1774_v15, %v205_v10  ;;  %v142_v57 = vmul.u32 %v1867_v2, %v126_v42  ;;  %v1576_v33 = vld [vmem:[#allocation5 + $0x10] ss:$8 sps:$4 sm:$0xff]   ;;  %1211 = vmatprep.subr.bf16.mxu0 %v1574_v30  ;;  %v1579_v43 = vld [vmem:[#allocation5 + $0x20] ss:$8 sps:$4 sm:$0xff]  }
  0xc3   :  { %v1887_v53 = vmul.u32.u64.low %v1867_v2, %v134_v47  ;;  %v1888_v54 = vmul.u32.u64.high %v1867_v2, %v134_v47, %v1887_v53  ;;  %v1891_v55 = vmul.u32.u64.low %v1867_v2, %v130_v46  ;;  %v1892_v56 = vmul.u32.u64.high %v1867_v2, %v130_v46, %v1891_v55 }
  0xc4   :  { %v222_v58 = vor.u32 %v221_v45, %v220_v52  ;;  %vm226_vm6 = vcmp.lt.s32.totalorder %v1869_v3, 4  ;;  %v208_v60 = vshll.u32 %v1770_v6, %v205_v10  ;;  %v209_v62 = vshrl.u32 %v1771_v8, %v206_v27  ;;  %v1580_v45 = vld [vmem:[#allocation5 + $0x34] ss:$8 sps:$4 sm:$0xff]  }
  0xc5   :  { %v212_v63 = vshrl.u32 %v1772_v11, %v206_v27  ;;  %v211_v1 = vshll.u32 %v1771_v8, %v205_v10  ;;  %v214_v5 = vshll.u32 %v1772_v11, %v205_v10  ;;  %v215_v7 = vshrl.u32 %v1773_v13, %v206_v27  ;;  %1212 = vmatpush1.bf16.msra.mxu0 %v1576_v33 }
  0xc6   :  { %v236_v0 = vsel %vm226_vm6, %v222_v58, 1326507024  ;;  %vm144_vm7 = vc.u32 %v1888_v54, %v1891_v55  ;;  %v145_v2 = vadd.s32 1, %v1892_v56  ;;  %v232_v4 = vsel %vm226_vm6, %v219_v51, 920167782  ;;  %1213 = vmatprep.subr.bf16.mxu0 %v1577_v35 }
  0xc7   :  { %v210_v9 = vor.u32 %v209_v62, %v208_v60  ;;  %v207_v12 = vshrl.u32 %v1770_v6, %v206_v27  ;;  %v213_v14 = vor.u32 %v212_v63, %v211_v1  ;;  %v216_v15 = vor.u32 %v215_v7, %v214_v5  ;;  %v1586_v62 = vld [vmem:[#allocation5 + $0x54] ss:$8 sps:$4 sm:$0xff]  }
  0xc8   :  { %vm225_vm8 = vcmp.lt.s32.totalorder %v1869_v3, 3  ;;  %v146_v16 = vsel %vm144_vm7, %v145_v2, %v1892_v56  ;;  %vm223_vm9 = vcmp.lt.s32.totalorder %v1869_v3, 1  ;;  %vm224_vm10 = vcmp.lt.s32.totalorder %v1869_v3, 2  ;;  %v1583_v56 = vld [vmem:[#allocation5 + $0x44] ss:$8 sps:$4 sm:$0xff]  }
  0xc9   :  { %v237_v8 = vsel %vm225_vm8, %v219_v51, %v236_v0  ;;  %v147_v10 = vadd.s32 %v146_v16, %v142_v57  ;;  %v228_v11 = vsel %vm226_vm6, %v216_v15, 2102212464  ;;  %v231_v13 = vsel %vm223_vm9, %v210_v9, %v213_v14  ;;  %1214 = vmatpush1.bf16.msra.mxu0 %v1579_v43  ;;  %v1582_v51 = vld [vmem:[#allocation5 + $0x30] ss:$8 sps:$4 sm:$0xff]  }
  0xca   :  { %v233_v17 = vsel %vm225_vm8, %v216_v15, %v232_v4  ;;  %v235_v18 = vsel %vm223_vm9, %v213_v14, %v216_v15  ;;  %v239_v19 = vshll.u32 %v199_v59, 8  ;;  %v227_v21 = vsel %vm223_vm9, %v207_v12, %v210_v9  ;;  %1215 = vmatprep.subr.bf16.mxu0 %v1580_v45  ;;  %v1585_v59 = vld [vmem:[#allocation5 + $0x40] ss:$8 sps:$4 sm:$0xff]   ;;  %v1588_v2 = vld [vmem:[#allocation5 + $0x50] ss:$8 sps:$4 sm:$0xff]  }
  0xcb   :  { %v234_v6 = vsel %vm224_vm10, %v231_v13, %v233_v17  ;;  %v148_v20 = vadd.s32 536870912, %v147_v10  ;;  %v229_v22 = vsel %vm225_vm8, %v213_v14, %v228_v11  ;;  %v238_v23 = vsel %vm224_vm10, %v235_v18, %v237_v8  ;;  %v1589_v15 = vld [vmem:[#allocation5 + $0x64] ss:$8 sps:$4 sm:$0xff]   ;;  %v1591_v11 = vld [vmem:[#allocation5 + $0x60] ss:$8 sps:$4 sm:$0xff]  }
  0xcc   :  { %v1917_v26 = vmul.u32.u64.low %v239_v19, %v238_v23  ;;  %v1918_v27 = vmul.u32.u64.high %v239_v19, %v238_v23, %v1917_v26  ;;  %v1920_v28 = vmul.u32.u64.low %v239_v19, %v234_v6  ;;  %v1921_v29 = vmul.u32.u64.high %v239_v19, %v234_v6, %v1920_v28 }
  0xcd   :  { %v1924_v31 = vshrl.u32 %v148_v20, 30  ;;  %v230_v32 = vsel %vm224_vm10, %v227_v21, %v229_v22  ;;  %1216 = vmatpush1.bf16.msra.mxu0 %v1582_v51  ;;  %v143_v0 = vadd.s32 %v1891_v55, %v1888_v54  ;;  %vm179_vm6 = vweird.f32 %v1857_v48  ;;  %v1558_v26 = vld [vmem:[#allocation2 + $0x16c] ss:$16 sps:$4 sm:$0xff]  }
  0xce   :  { %vm248_vm11 = vc.u32 %v1918_v27, %v1920_v28  ;;  %v249_v39 = vadd.s32 1, %v1921_v29  ;;  %v246_v41 = vmul.u32 %v239_v19, %v230_v32  ;;  %1217 = vmatprep.subr.bf16.mxu0 %v1583_v56  ;;  %v247_v19 = vadd.s32 %v1920_v28, %v1918_v27 }
  0xcf   :  { %v150_v34 = vshll.u32 %v1924_v31, 30  ;;  %v173_v33 = vsub.s32 4, %v1924_v31  ;;  %vm283_vm9 = vweird.f32 %v1859_v49 }
  0xd0   :  { %v250_v42 = vsel %vm248_vm11, %v249_v39, %v1921_v29 }
  0xd1   :  { %v151_v40 = vsub.s32 %v147_v10, %v150_v34  ;;  %v251_v3 = vadd.s32 %v250_v42, %v246_v41  ;;  %1218 = vmatpush1.bf16.msra.mxu0 %v1585_v59  ;;  %v174_v39 = vsel %vm89_vm14, %v173_v33, %v1924_v31  ;;  %v1564_v33 = vld [vmem:[#allocation2 + $0x1ac] ss:$16 sps:$4 sm:$0xff]  }
  0xd2   :  { %1219 = vmatprep.subr.bf16.mxu0 %v1586_v62  ;;  %v176_v41 = vsel %vm1943_vm15, 0, %v174_v39  ;;  %v1568_v39 = vld [vmem:[#allocation2 + $0x1e8] ss:$16 sps:$4 sm:$0xff]  }
  0xd3   :  { %v153_v44 = vsub.s32 0, %v151_v40  ;;  %v252_v47 = vadd.s32 536870912, %v251_v3 }
  0xd5   :  { %v1311_v46 = vmin.u32 %v153_v44, %v151_v40  ;;  %v1933_v53 = vshrl.u32 %v252_v47, 30  ;;  %1220 = vmatpush1.bf16.msra.mxu0 %v1588_v2 }
  0xd6   :  { %1221 = vmatprep.subr.bf16.mxu0 %v1589_v15  ;;  %v1528_v15 = vld [vmem:[#allocation2 + $0x2c] ss:$16 sps:$4 sm:$0xff]  }
  0xd7   :  { %v155_v52 = vclz %v1311_v46  ;;  %v254_v58 = vshll.u32 %v1933_v53, 30 }
  0xd9   :  { %v1312_v57 = vadd.s32 4294967294, %v155_v52  ;;  %v255_v60 = vsub.s32 %v251_v3, %v254_v58  ;;  %1222 = vmatpush1.bf16.msra.mxu0 %v1591_v11  ;;  %v180_v3 = vadd.s32 3, %v176_v41  ;;  %v1537_v11 = vld [vmem:[#allocation2 + $0x8c] ss:$16 sps:$4 sm:$0xff]  }
  0xda   :  { %v1595_v41 = vld [vmem:[#allocation5 + $0x84] ss:$8 sps:$4 sm:$0xff]  }
  0xdb   :  { %vm1313_vm12 = vcmp.lt.s32.totalorder %v1312_v57, 0  ;;  %v257_v7 = vsub.s32 0, %v255_v60  ;;  %v181_v51 = vand.u32 3, %v180_v3  ;;  %v1601_v3 = vld [vmem:[#allocation5 + $0xa4] ss:$8 sps:$4 sm:$0xff]  }
  0xdc   :  { %v158_v63 = vsel %vm1313_vm12, 0, %v1312_v57 }
  0xdd   :  { %v159_v1 = vsub.s32 32, %v158_v63  ;;  %v163_v5 = vsub.s32 4294967266, %v158_v63  ;;  %v160_v4 = vshll.u32 %v151_v40, %v158_v63  ;;  %v1315_v14 = vmin.u32 %v257_v7, %v255_v60 }
  0xde   :  { %v277_v40 = vsub.s32 4, %v1933_v53  ;;  %vm183_vm2 = vcmp.eq.s32.totalorder %v181_v51, 0  ;;  %vm186_vm3 = vcmp.eq.s32.totalorder %v181_v51, 2  ;;  %vm182_vm4 = vcmp.lt.s32.totalorder %v181_v51, 2  ;;  %v1609_v51 = vld [vmem:[#allocation5 + $0xc0] ss:$8 sps:$4 sm:$0xff]  }
  0xdf   :  { %v161_v9 = vshrl.u32 %v143_v0, %v159_v1  ;;  %v164_v12 = vadd.s32 127, %v163_v5  ;;  %v259_v10 = vclz %v1315_v14  ;;  %v1523_v14 = vld [vmem:[#allocation2 + $0x8] ss:$16 sps:$4 sm:$0xff]  }
  0xe0   :  { %v278_v44 = vsel %vm193_vm0, %v277_v40, %v1933_v53  ;;  %v1594_v40 = vld [vmem:[#allocation5 + $0x70] ss:$8 sps:$4 sm:$0xff]  }
  0xe1   :  { %v162_v16 = vor.u32 %v161_v9, %v160_v4  ;;  %v165_v8 = vshll.u32 %v164_v12, 23  ;;  %v1316_v17 = vadd.s32 4294967294, %v259_v10  ;;  %v280_v47 = vsel %vm192_vm1, 0, %v278_v44  ;;  %v1534_v10 = vld [vmem:[#allocation2 + $0x6c] ss:$16 sps:$4 sm:$0xff]  }
  0xe2   :  { %v284_v57 = vadd.s32 3, %v280_v47  ;;  %v1600_v44 = vld [vmem:[#allocation5 + $0x90] ss:$8 sps:$4 sm:$0xff]   ;;  %v1607_v47 = vld [vmem:[#allocation5 + $0xc4] ss:$8 sps:$4 sm:$0xff]  }
  0xe3   :  { %v166_v13 = vor.u32 4788187, %v165_v8  ;;  %v169_v55 = vcvt.s32.f32 %v162_v16  ;;  %vm1317_vm13 = vcmp.lt.s32.totalorder %v1316_v17, 0  ;;  %v1531_v16 = vld [vmem:[#allocation2 + $0x4c] ss:$16 sps:$4 sm:$0xff]  }
  0xe4   :  { %v262_v6 = vsel %vm1317_vm13, 0, %v1316_v17  ;;  %v285_v61 = vand.u32 3, %v284_v57  ;;  %v1529_v8 = vld [vmem:[#allocation2 + $0x48] ss:$16 sps:$4 sm:$0xff]   ;;  %v1540_v17 = vld [vmem:[#allocation2 + $0xac] ss:$16 sps:$4 sm:$0xff]  }
  0xe5   :  { %v167_v54 = vand.u32 2147483647, %v166_v13  ;;  %v263_v20 = vsub.s32 32, %v262_v6  ;;  %v267_v21 = vsub.s32 4294967266, %v262_v6  ;;  %v264_v23 = vshll.u32 %v255_v60, %v262_v6  ;;  %v1535_v13 = vld [vmem:[#allocation2 + $0x88] ss:$16 sps:$4 sm:$0xff]  }
  0xe6   :  { %vm290_vm5 = vcmp.eq.s32.totalorder %v285_v61, 2  ;;  %vm287_vm7 = vcmp.eq.s32.totalorder %v285_v61, 0  ;;  %vm286_vm8 = vcmp.lt.s32.totalorder %v285_v61, 2  ;;  %v1541_v6 = vld [vmem:[#allocation2 + $0xc8] ss:$16 sps:$4 sm:$0xff]  }
  0xe7   :  { %v170_v18 = vmul.f32 %v169_v55, %v167_v54  ;;  %v265_v24 = vshrl.u32 %v247_v19, %v263_v20  ;;  %v268_v25 = vadd.s32 127, %v267_v21  ;;  %v1538_v54 = vld [vmem:[#allocation2 + $0xa8] ss:$16 sps:$4 sm:$0xff]   ;;  %v1543_v55 = vld [vmem:[#allocation2 + $0xcc] ss:$16 sps:$4 sm:$0xff]  }
  0xe8   :  { %v1544_v19 = vld [vmem:[#allocation2 + $0xe8] ss:$16 sps:$4 sm:$0xff]   ;;  %v1549_v20 = vld [vmem:[#allocation2 + $0x10c] ss:$16 sps:$4 sm:$0xff]  }
  0xe9   :  { %v171_v22 = vxor.u32 2147483648, %v170_v18  ;;  %v266_v30 = vor.u32 %v265_v24, %v264_v23  ;;  %v269_v32 = vshll.u32 %v268_v25, 23  ;;  %v1547_v21 = vld [vmem:[#allocation2 + $0x108] ss:$16 sps:$4 sm:$0xff]   ;;  %v1555_v24 = vld [vmem:[#allocation2 + $0x14c] ss:$16 sps:$4 sm:$0xff]  }
  0xea   :  { %v1550_v23 = vld [vmem:[#allocation2 + $0x128] ss:$16 sps:$4 sm:$0xff]   ;;  %v1613_v57 = vld [vmem:[#allocation5 + $0xe4] ss:$8 sps:$4 sm:$0xff]  }
  0xeb   :  { %v172_v29 = vsel %vm89_vm14, %v171_v22, %v170_v18  ;;  %v270_v28 = vor.u32 4788187, %v269_v32  ;;  %v273_v35 = vcvt.s32.f32 %v266_v30  ;;  %v1546_v18 = vld [vmem:[#allocation2 + $0xec] ss:$16 sps:$4 sm:$0xff]   ;;  %v1553_v25 = vld [vmem:[#allocation2 + $0x148] ss:$16 sps:$4 sm:$0xff]  }
  0xec   :  { %v175_v27 = vsel %vm1943_vm15, %v1857_v48, %v172_v29  ;;  %v1526_v48 = vld [vmem:[#allocation2 + $0x28] ss:$16 sps:$4 sm:$0xff]   ;;  %v1552_v22 = vld [vmem:[#allocation2 + $0x12c] ss:$16 sps:$4 sm:$0xff]  }
  0xed   :  { %1667 = vcosq.f32 %v175_v27  ;;  %v271_v34 = vand.u32 2147483647, %v270_v28  ;;  %v1556_v29 = vld [vmem:[#allocation2 + $0x168] ss:$16 sps:$4 sm:$0xff]   ;;  %v1561_v30 = vld [vmem:[#allocation2 + $0x18c] ss:$16 sps:$4 sm:$0xff]  }
  0xee   :  { %1669 = vsinq.f32 %v175_v27  ;;  %v1559_v32 = vld [vmem:[#allocation2 + $0x188] ss:$16 sps:$4 sm:$0xff]   ;;  %v1567_v28 = vld [vmem:[#allocation2 + $0x1cc] ss:$16 sps:$4 sm:$0xff]  }
  0xef   :  { %v274_v50 = vmul.f32 %v273_v35, %v271_v34  ;;  %v1562_v27 = vld [vmem:[#allocation2 + $0x1a8] ss:$16 sps:$4 sm:$0xff]   ;;  %v1570_v35 = vld [vmem:[#allocation2 + $0x1ec] ss:$16 sps:$4 sm:$0xff]  }
  0xf0   :  { %v1565_v34 = vld [vmem:[#allocation2 + $0x1c8] ss:$16 sps:$4 sm:$0xff]  }
  0xf1   :  { %v275_v42 = vxor.u32 2147483648, %v274_v50  ;;  %v1618_v61 = vld [vmem:[#allocation5 + $0xf0] ss:$8 sps:$4 sm:$0xff]  }
  0xf3   :  { %v276_v43 = vsel %vm193_vm0, %v275_v42, %v274_v50  ;;  %v1592_v50 = vld [vmem:[#allocation5 + $0x74] ss:$8 sps:$4 sm:$0xff]   ;;  %v1597_v42 = vld [vmem:[#allocation5 + $0x80] ss:$8 sps:$4 sm:$0xff]  }
  0xf4   :  { %v279_v45 = vsel %vm192_vm1, %v1859_v49, %v276_v43  ;;  %v1532_v49 = vld [vmem:[#allocation2 + $0x68] ss:$16 sps:$4 sm:$0xff]   ;;  %1223 = vmatprep.subr.bf16.mxu0 %v1592_v50  ;;  %v1598_v43 = vld [vmem:[#allocation5 + $0x94] ss:$8 sps:$4 sm:$0xff]   ;;  %v1645_v50 = vld [vmem:[#allocation5 + $0x184] ss:$8 sps:$4 sm:$0xff]  }
  0xf5   :  { %1671 = vcosq.f32 %v279_v45  ;;  %1224 = vmatpush1.bf16.msra.mxu0 %v1594_v40 }
  0xf6   :  { %1673 = vsinq.f32 %v279_v45  ;;  %1225 = vmatprep.subr.bf16.mxu0 %v1595_v41  ;;  %v1603_v45 = vld [vmem:[#allocation5 + $0xa0] ss:$8 sps:$4 sm:$0xff]  }
  0xf7   :  { %v1668_v46 = vpop.eup %1667 }
  0xf8   :  { %v1670_v31 = vpop.eup %1669  ;;  %v187_v56 = vxor.u32 2147483648, %v1668_v46 }
  0xf9   :  { %v184_v52 = vxor.u32 2147483648, %v1670_v31  ;;  %1226 = vmatpush1.bf16.msra.mxu0 %v1597_v42 }
  0xfa   :  { %v188_v59 = vsel %vm186_vm3, %v187_v56, %v1670_v31  ;;  %1227 = vmatprep.subr.bf16.mxu0 %v1598_v43  ;;  %v1606_v31 = vld [vmem:[#allocation5 + $0xb0] ss:$8 sps:$4 sm:$0xff]  }
  0xfb   :  { %v185_v58 = vsel %vm183_vm2, %v1668_v46, %v184_v52  ;;  %v1604_v46 = vld [vmem:[#allocation5 + $0xb4] ss:$8 sps:$4 sm:$0xff]   ;;  %v1612_v56 = vld [vmem:[#allocation5 + $0xd0] ss:$8 sps:$4 sm:$0xff]  }
  0xfc   :  { %v189_v53 = vsel %vm182_vm4, %v185_v58, %v188_v59  ;;  %v1610_v52 = vld [vmem:[#allocation5 + $0xd4] ss:$8 sps:$4 sm:$0xff]   ;;  %v1615_v58 = vld [vmem:[#allocation5 + $0xe0] ss:$8 sps:$4 sm:$0xff]  }
  0xfd   :  { %v190_v5 = vsel %vm179_vm6, nan, %v189_v53  ;;  %1228 = vmatpush1.bf16.msra.mxu0 %v1600_v44  ;;  %v1616_v59 = vld [vmem:[#allocation5 + $0xf4] ss:$8 sps:$4 sm:$0xff]   ;;  %v361_v53 = vld [vmem:[%s1993_s3] sm:$0xf] }
  0xfe   :  { %v1962_v9 = vpack.c.bf16 %v190_v5, %v190_v5  ;;  %1229 = vmatprep.subr.bf16.mxu0 %v1601_v3  ;;  %v1643_v3 = vld [vmem:[#allocation5 + $0x180] ss:$8 sps:$4 sm:$0xff]  }
  0xff   :  { %v1672_v60 = vpop.eup %1671 }
 0x100   :  { %v1674_v62 = vpop.eup %1673  ;;  %v291_v63 = vxor.u32 2147483648, %v1672_v60 }
 0x101   :  { %v288_v0 = vxor.u32 2147483648, %v1674_v62  ;;  %1230 = vmatpush1.bf16.msra.mxu0 %v1603_v45 }
 0x102   :  { %v292_v1 = vsel %vm290_vm5, %v291_v63, %v1674_v62  ;;  %1231 = vmatprep.subr.bf16.mxu0 %v1604_v46  ;;  %v366_v62 = vrot.slane %v361_v53, %v1842_v37  ;;  %v370_v63 = vrot.slane %v361_v53, %v1845_v38 }
 0x103   :  { %v289_v7 = vsel %vm287_vm7, %v1672_v60, %v288_v0  ;;  %v1621_v60 = vld [vmem:[#allocation5 + $0x104] ss:$8 sps:$4 sm:$0xff]  }
 0x104   :  { %v293_v2 = vsel %vm286_vm8, %v289_v7, %v292_v1 }
 0x105   :  { %v294_v4 = vsel %vm283_vm9, nan, %v293_v2  ;;  %1232 = vmatpush1.bf16.msra.mxu0 %v1606_v31  ;;  %v1648_v31 = vld [vmem:[#allocation5 + $0x194] ss:$8 sps:$4 sm:$0xff]  }
 0x106   :  { %v296_v12 = vpack.c.bf16 %v294_v4, %v294_v4  ;;  %1233 = vmatprep.subr.bf16.mxu0 %v1607_v47 }
 0x108   :  { %735 = vmatprep.mubr.bf16.mxu1 %v296_v12 }
 0x109   :  { %736 = vmatmul.mubr.bf16.vlgmr.msra.gmra.mrb[0].mxu1 %v1962_v9  ;;  %1234 = vmatpush1.bf16.msra.mxu0 %v1609_v51 }
 0x10a   :  { %745 = vmatpush1.bf16.msra.mxu1 %v1523_v14  ;;  %776 = vmatprep.mubr.bf16.mxu1 %v296_v12 }
 0x10b   :  { %746 = vmatprep.subr.bf16.mxu1 %v1528_v15  ;;  %1235 = vmatprep.subr.bf16.mxu0 %v1610_v52  ;;  %v1646_v52 = vld [vmem:[#allocation5 + $0x190] ss:$8 sps:$4 sm:$0xff]  }
 0x10d   :  { %1236 = vmatpush1.bf16.msra.mxu0 %v1612_v56  ;;  %v1651_v56 = vld [vmem:[#allocation5 + $0x1a4] ss:$8 sps:$4 sm:$0xff]  }
 0x10e   :  { %747 = vmatpush1.bf16.msra.mxu1 %v1526_v48  ;;  %1237 = vmatprep.subr.bf16.mxu0 %v1613_v57  ;;  %v1649_v57 = vld [vmem:[#allocation5 + $0x1a0] ss:$8 sps:$4 sm:$0xff]  }
 0x10f   :  { %748 = vmatprep.subr.bf16.mxu1 %v1531_v16 }
 0x111   :  { %1238 = vmatpush1.bf16.msra.mxu0 %v1615_v58  ;;  %v1654_v58 = vld [vmem:[#allocation5 + $0x1b4] ss:$8 sps:$4 sm:$0xff]  }
 0x112   :  { %749 = vmatpush1.bf16.msra.mxu1 %v1529_v8  ;;  %1239 = vmatprep.subr.bf16.mxu0 %v1616_v59  ;;  %v1652_v59 = vld [vmem:[#allocation5 + $0x1b0] ss:$8 sps:$4 sm:$0xff]  }
 0x113   :  { %750 = vmatprep.subr.bf16.mxu1 %v1534_v10 }
 0x115   :  { %1240 = vmatpush1.bf16.msra.mxu0 %v1618_v61  ;;  %v1657_v61 = vld [vmem:[#allocation5 + $0x1c4] ss:$8 sps:$4 sm:$0xff]  }
 0x116   :  { %751 = vmatpush1.bf16.msra.mxu1 %v1532_v49  ;;  %1250 = vmatprep.subr.bf16.mxu0 %v1621_v60 }
 0x117   :  { %752 = vmatprep.subr.bf16.mxu1 %v1537_v11 }
 0x11a   :  { %753 = vmatpush1.bf16.msra.mxu1 %v1535_v13 }
 0x11b   :  { %754 = vmatprep.subr.bf16.mxu1 %v1540_v17 }
 0x11e   :  { %755 = vmatpush1.bf16.msra.mxu1 %v1538_v54 }
 0x11f   :  { %756 = vmatprep.subr.bf16.mxu1 %v1543_v55  ;;  %v1619_v55 = vld [vmem:[#allocation5 + $0x100] ss:$8 sps:$4 sm:$0xff]  }
 0x122   :  { %757 = vmatpush1.bf16.msra.mxu1 %v1541_v6 }
 0x123   :  { %758 = vmatprep.subr.bf16.mxu1 %v1546_v18  ;;  %v1624_v18 = vld [vmem:[#allocation5 + $0x114] ss:$8 sps:$4 sm:$0xff]  }
 0x126   :  { %759 = vmatpush1.bf16.msra.mxu1 %v1544_v19  ;;  %v1622_v19 = vld [vmem:[#allocation5 + $0x110] ss:$8 sps:$4 sm:$0xff]  }
 0x127   :  { %760 = vmatprep.subr.bf16.mxu1 %v1549_v20  ;;  %v1627_v20 = vld [vmem:[#allocation5 + $0x124] ss:$8 sps:$4 sm:$0xff]  }
 0x12a   :  { %761 = vmatpush1.bf16.msra.mxu1 %v1547_v21  ;;  %v1625_v21 = vld [vmem:[#allocation5 + $0x120] ss:$8 sps:$4 sm:$0xff]  }
 0x12b   :  { %762 = vmatprep.subr.bf16.mxu1 %v1552_v22  ;;  %v1630_v22 = vld [vmem:[#allocation5 + $0x134] ss:$8 sps:$4 sm:$0xff]  }
 0x12e   :  { %763 = vmatpush1.bf16.msra.mxu1 %v1550_v23  ;;  %v1628_v23 = vld [vmem:[#allocation5 + $0x130] ss:$8 sps:$4 sm:$0xff]  }
 0x12f   :  { %764 = vmatprep.subr.bf16.mxu1 %v1555_v24  ;;  %v1633_v24 = vld [vmem:[#allocation5 + $0x144] ss:$8 sps:$4 sm:$0xff]  }
 0x132   :  { %765 = vmatpush1.bf16.msra.mxu1 %v1553_v25  ;;  %v1631_v25 = vld [vmem:[#allocation5 + $0x140] ss:$8 sps:$4 sm:$0xff]  }
 0x133   :  { %766 = vmatprep.subr.bf16.mxu1 %v1558_v26  ;;  %v1636_v26 = vld [vmem:[#allocation5 + $0x154] ss:$8 sps:$4 sm:$0xff]  }
 0x136   :  { %767 = vmatpush1.bf16.msra.mxu1 %v1556_v29  ;;  %v1634_v29 = vld [vmem:[#allocation5 + $0x150] ss:$8 sps:$4 sm:$0xff]  }
 0x137   :  { %768 = vmatprep.subr.bf16.mxu1 %v1561_v30  ;;  %v1639_v30 = vld [vmem:[#allocation5 + $0x164] ss:$8 sps:$4 sm:$0xff]  }
 0x13a   :  { %769 = vmatpush1.bf16.msra.mxu1 %v1559_v32  ;;  %v373_v32 = vsub.s32 2, %v1839_v36 }
 0x13b   :  { %770 = vmatprep.subr.bf16.mxu1 %v1564_v33  ;;  %v1637_v33 = vld [vmem:[#allocation5 + $0x160] ss:$8 sps:$4 sm:$0xff]  }
 0x13e   :  { %771 = vmatpush1.bf16.msra.mxu1 %v1562_v27  ;;  %v377_v27 = vsub.s32 3, %v1839_v36 }
 0x13f   :  { %772 = vmatprep.subr.bf16.mxu1 %v1567_v28  ;;  %v1642_v28 = vld [vmem:[#allocation5 + $0x174] ss:$8 sps:$4 sm:$0xff]  }
 0x142   :  { %773 = vmatpush1.bf16.msra.mxu1 %v1565_v34  ;;  %v374_v34 = vrot.slane %v361_v53, %v373_v32 }
 0x143   :  { %774 = vmatprep.subr.bf16.mxu1 %v1570_v35  ;;  %v378_v35 = vrot.slane %v361_v53, %v377_v27 }
 0x146   :  { %775 = vmatpush1.bf16.msra.mxu1 %v1568_v39  ;;  %v1640_v39 = vld [vmem:[#allocation5 + $0x170] ss:$8 sps:$4 sm:$0xff]  }
 0x149   :  { %777 = vmatmul.mubr.bf16.vlgmr.msra.gmra.mrb[4].mxu1 %v1962_v9 }
 0x1dc   :  { %v737_v0 = vpop.f32.mrb[0].mxu1 }
 0x1dd   :  { %v738_v1 = vadd.f32 %v737_v0, %v366_v62  ;;  %v739_v5 = vpop.f32.mrb[1].mxu1 }
 0x1de   :  { %v740_v7 = vadd.f32 %v739_v5, %v370_v63  ;;  %v741_v2 = vpop.f32.mrb[2].mxu1  ;;  %v1655_v63 = vld [vmem:[#allocation5 + $0x1c0] ss:$8 sps:$4 sm:$0xff]   ;;  %v1658_v5 = vld [vmem:[#allocation5 + $0x1d0] ss:$8 sps:$4 sm:$0xff]  }
 0x1df   :  { %v785_v4 = vsub.f32 0.0, %v738_v1  ;;  %v742_v9 = vpop.f32.mrb[3].mxu1  ;;  %v1661_v2 = vld [vmem:[#allocation5 + $0x1e0] ss:$8 sps:$4 sm:$0xff]  }
 0x1e0   :  { %v786_v12 = vsub.f32 0.0, %v740_v7 }
 0x1e1   :  { %v789_v14 = vmul.f32 1.442695, %v785_v4  ;;  %v1666_v4 = vld [vmem:[#allocation5 + $0x1f4] ss:$8 sps:$4 sm:$0xff]  }
 0x1e2   :  { %v791_v15 = vmul.f32 1.442695, %v786_v12  ;;  %v1664_v12 = vld [vmem:[#allocation5 + $0x1f0] ss:$8 sps:$4 sm:$0xff]  }
 0x1e3   :  { %1675 = vpow2.f32 %v789_v14 }
 0x1e4   :  { %1677 = vpow2.f32 %v791_v15 }
 0x1ed   :  { %v1676_v48 = vpop.eup %1675 }
 0x1ee   :  { %v1678_v16 = vpop.eup %1677  ;;  %v797_v8 = vadd.f32 1.0, %v1676_v48 }
 0x1ef   :  { %v798_v10 = vadd.f32 1.0, %v1678_v16 }
 0x1f0   :  { %1679 = vrcp.f32 %v797_v8 }
 0x1f1   :  { %1681 = vrcp.f32 %v798_v10  ;;  %v877_v10 = vld [vmem:[%s1995_s5] sm:$0x3] }
 0x1fa   :  { %v1680_v49 = vpop.eup %1679 }
 0x1fb   :  { %v1682_v11 = vpop.eup %1681  ;;  %v805_v13 = vmul.f32 %v1680_v49, %v738_v1  ;;  %v1660_v1 = vld [vmem:[#allocation5 + $0x1d4] ss:$8 sps:$4 sm:$0xff]   ;;  %v882_v49 = vrot.slane %v877_v10, %v1842_v37 }
 0x1fc   :  { %v806_v17 = vmul.f32 %v1682_v11, %v740_v7  ;;  %v1663_v7 = vld [vmem:[#allocation5 + $0x1e4] ss:$8 sps:$4 sm:$0xff]   ;;  %v886_v11 = vrot.slane %v877_v10, %v1845_v38 }
 0x1fd   :  { %v809_v6 = vpack.c.bf16 %v805_v13, %v805_v13 }
 0x1fe   :  { %v810_v54 = vpack.c.bf16 %v806_v17, %v806_v17 }
 0x200   :  { %1241 = vmatprep.mubr.bf16.mxu0 %v810_v54 }
 0x201   :  { %1242 = vmatmul.mubr.bf16.vlgmr.msra.gmra.mrb[0].mxu0 %v809_v6 }
 0x202   :  { %1251 = vmatpush1.bf16.msra.mxu0 %v1619_v55 }
 0x203   :  { %1252 = vmatprep.subr.bf16.mxu0 %v1624_v18 }
 0x206   :  { %1253 = vmatpush1.bf16.msra.mxu0 %v1622_v19 }
 0x207   :  { %1254 = vmatprep.subr.bf16.mxu0 %v1627_v20 }
 0x20a   :  { %1255 = vmatpush1.bf16.msra.mxu0 %v1625_v21 }
 0x20b   :  { %1256 = vmatprep.subr.bf16.mxu0 %v1630_v22 }
 0x20e   :  { %1257 = vmatpush1.bf16.msra.mxu0 %v1628_v23 }
 0x20f   :  { %1258 = vmatprep.subr.bf16.mxu0 %v1633_v24 }
 0x212   :  { %1259 = vmatpush1.bf16.msra.mxu0 %v1631_v25 }
 0x213   :  { %1260 = vmatprep.subr.bf16.mxu0 %v1636_v26 }
 0x216   :  { %1261 = vmatpush1.bf16.msra.mxu0 %v1634_v29 }
 0x217   :  { %1262 = vmatprep.subr.bf16.mxu0 %v1639_v30 }
 0x21a   :  { %1263 = vmatpush1.bf16.msra.mxu0 %v1637_v33 }
 0x21b   :  { %1264 = vmatprep.subr.bf16.mxu0 %v1642_v28 }
 0x21c   :  { %v778_v40 = vpop.f32.mrb[4].mxu1 }
 0x21d   :  { %v779_v41 = vadd.f32 %v778_v40, %v374_v34  ;;  %v780_v42 = vpop.f32.mrb[5].mxu1 }
 0x21e   :  { %v781_v43 = vadd.f32 %v780_v42, %v378_v35  ;;  %v782_v44 = vpop.f32.mrb[6].mxu1  ;;  %1265 = vmatpush1.bf16.msra.mxu0 %v1640_v39 }
 0x21f   :  { %v787_v45 = vsub.f32 0.0, %v779_v41  ;;  %v783_v46 = vpop.f32.mrb[7].mxu1  ;;  %1266 = vmatprep.subr.bf16.mxu0 %v1645_v50 }
 0x220   :  { %v788_v36 = vsub.f32 0.0, %v781_v43 }
 0x221   :  { %v793_v47 = vmul.f32 1.442695, %v787_v45 }
 0x222   :  { %v795_v51 = vmul.f32 1.442695, %v788_v36  ;;  %1267 = vmatpush1.bf16.msra.mxu0 %v1643_v3 }
 0x223   :  { %1683 = vpow2.f32 %v793_v47  ;;  %1268 = vmatprep.subr.bf16.mxu0 %v1648_v31 }
 0x224   :  { %1685 = vpow2.f32 %v795_v51 }
 0x226   :  { %1269 = vmatpush1.bf16.msra.mxu0 %v1646_v52 }
 0x227   :  { %1270 = vmatprep.subr.bf16.mxu0 %v1651_v56 }
 0x22a   :  { %1271 = vmatpush1.bf16.msra.mxu0 %v1649_v57 }
 0x22b   :  { %1272 = vmatprep.subr.bf16.mxu0 %v1654_v58 }
 0x22d   :  { %v1684_v60 = vpop.eup %1683 }
 0x22e   :  { %v1686_v53 = vpop.eup %1685  ;;  %v799_v62 = vadd.f32 1.0, %v1684_v60  ;;  %1273 = vmatpush1.bf16.msra.mxu0 %v1652_v59 }
 0x22f   :  { %v800_v0 = vadd.f32 1.0, %v1686_v53  ;;  %1274 = vmatprep.subr.bf16.mxu0 %v1657_v61 }
 0x230   :  { %1687 = vrcp.f32 %v799_v62 }
 0x231   :  { %1689 = vrcp.f32 %v800_v0 }
 0x232   :  { %1275 = vmatpush1.bf16.msra.mxu0 %v1655_v63 }
 0x233   :  { %1276 = vmatprep.subr.bf16.mxu0 %v1660_v1 }
 0x236   :  { %1277 = vmatpush1.bf16.msra.mxu0 %v1658_v5 }
 0x237   :  { %1278 = vmatprep.subr.bf16.mxu0 %v1663_v7 }
 0x23a   :  { %v1688_v9 = vpop.eup %1687  ;;  %1279 = vmatpush1.bf16.msra.mxu0 %v1661_v2 }
 0x23b   :  { %v1690_v14 = vpop.eup %1689  ;;  %v807_v15 = vmul.f32 %v1688_v9, %v779_v41  ;;  %1280 = vmatprep.subr.bf16.mxu0 %v1666_v4 }
 0x23c   :  { %v808_v48 = vmul.f32 %v1690_v14, %v781_v43 }
 0x23d   :  { %v811_v8 = vpack.c.bf16 %v807_v15, %v807_v15 }
 0x23e   :  { %v812_v16 = vpack.c.bf16 %v808_v48, %v808_v48  ;;  %1281 = vmatpush1.bf16.msra.mxu0 %v1664_v12 }
 0x240   :  { %1282 = vmatprep.mubr.bf16.mxu0 %v812_v16 }
 0x241   :  { %1283 = vmatmul.mubr.bf16.vlgmr.msra.gmra.mrb[0].mxu0 %v811_v8 }
 0x314   :  { %v1284_v13 = vpop.f32.mrb[0].mxu0 }
 0x315   :  { %v1446_v17 = vadd.f32 %v1284_v13, %v882_v49  ;;  %v1286_v54 = vpop.f32.mrb[1].mxu0 }
 0x316   :  { %v1447_v55 = vadd.f32 %v1286_v54, %v886_v11  ;;  %v1288_v6 = vpop.f32.mrb[2].mxu0 }
 0x317   :  { %1291 = vst [vmem:[#allocation7] sm:$0xff] %v1446_v17  ;;  %v1289_v18 = vpop.f32.mrb[3].mxu0 }
 0x318   :  { %1292 = vst [vmem:[#allocation7 + $0x8] sm:$0xff] %v1447_v55 }
 0x319   :  { %1746 = shalt.err (!%p1743_p6)
}
 0x31a   :  { %s1747_s10 = scalar_lea.hbm %s1996_s6, 256 }
 0x31b   :  { %p1748_p7 = scmp.ne.s32.totalorder %s1996_s6, %s1747_s10  ;;  %p1751_p8 = scmp.lt.u32.totalorder %s1747_s10, %s1996_s6 }
 0x31d   :  { %p1753_p9 = pnand %p1751_p8, %p1748_p7 }
 0x31f   :  { %1756 = shalt.err (!%p1753_p9)
}
 0x320   :  { %1302 = dma.vmem_to_hbm [thread:$0]  %s1300_s7, 256, %s1996_s6, [#allocation4]  }
 0x321   :  { %1761 = dma.done.wait [#allocation4], 256  }
 0x322   :  { %1762 = vsyncadd [#allocation4], 4294967040 }
 0x323   :  { %1306 = vsyncpa [#allocation3], 1 }
 0x324   :  { %1307 = vsyncpa [#allocation6], 1 }
 0x325   :  { %1308 = vsyncpa [#allocation4], 1 }

</bundles_post_ra>
